<compile_context>
chip_gen: v6e
topology: v6e:2x2x1
jax: 0.10.0
libtpu: 0.0.40
codegen_flags: <defaults>
</compile_context>

<pallas_src>
from functools import partial

import numpy as np
import jax
import jax.numpy as jnp
from jax.experimental import pallas as pl
from jax.experimental.pallas import tpu as pltpu


# --------------------------------------------------------------------------- #
# Host-side, one-time weight relayout (numpy; nothing of this runs per call).
# --------------------------------------------------------------------------- #
def _build_conv1_matrix_np(w1_hwio):
    """(3,3,1,8) HWIO conv1 -> dense unrolled matrix (64, 6*6*8).

    Row    = flattened 8x8 input pixel (8*r + c).
    Column = conv1 output position * 8 + out_channel, pos = 6*oi + oj.
    """
    w1 = np.asarray(w1_hwio, np.float32)[:, :, 0, :]            # (3, 3, 8)
    m = np.zeros((64, 36, 8), np.float32)
    for oi in range(6):
        for oj in range(6):
            for kh in range(3):
                for kw in range(3):
                    m[8 * (oi + kh) + (oj + kw), 6 * oi + oj, :] += w1[kh, kw, :]
    return m.reshape(64, 36 * 8)


def _build_conv2_matrix_np(w2_hwio):
    """(3,3,8,16) HWIO conv2 (stride 2 on 6x6x8) -> dense matrix (288, 64).

    Row    = conv1 output position * 8 + in_channel.
    Column = conv2 output position * 16 + out_channel, pos = 2*oi + oj.
    """
    w2 = np.asarray(w2_hwio, np.float32)                         # (3, 3, 8, 16)
    m = np.zeros((36, 8, 4, 16), np.float32)
    for oi in range(2):
        for oj in range(2):
            for kh in range(3):
                for kw in range(3):
                    m[6 * (2 * oi + kh) + (2 * oj + kw), :, 2 * oi + oj, :] += w2[kh, kw]
    return m.reshape(36 * 8, 4 * 16)


def init_tiny_cnn_params(w1, b1, w2, b2, w3, b3, wf, bf, n_pad=128):
    """One-time relayout of TinyCNN weights (HWIO convs, (in,out) fc) into the
    dense bf16 matmul operands used by the kernel.

    PyTorch OIHW conv weights map to HWIO via w.transpose(2, 3, 1, 0);
    nn.Linear.weight (out,in) maps via .T.
    """
    n_classes = int(np.asarray(wf).shape[1])
    w1_big = jnp.asarray(_build_conv1_matrix_np(w1), jnp.bfloat16)          # (64, 288)
    b1_t = jnp.asarray(np.tile(np.asarray(b1, np.float32).reshape(1, 8), (1, 36)))
    w2_big = jnp.asarray(_build_conv2_matrix_np(w2), jnp.bfloat16)          # (288, 64)
    b2_t = jnp.asarray(np.tile(np.asarray(b2, np.float32).reshape(1, 16), (1, 4)))
    w3_r = jnp.asarray(np.asarray(w3, np.float32).reshape(64, 32), jnp.bfloat16)
    b3_r = jnp.asarray(np.asarray(b3, np.float32).reshape(1, 32))
    wf_p = np.zeros((32, n_pad), np.float32)
    wf_p[:, :n_classes] = np.asarray(wf, np.float32)
    bf_p = np.zeros((1, n_pad), np.float32)
    bf_p[0, :n_classes] = np.asarray(bf, np.float32).reshape(-1)
    params = (w1_big, b1_t, w2_big, b2_t, w3_r, b3_r,
              jnp.asarray(wf_p, jnp.bfloat16), jnp.asarray(bf_p))
    return params, n_classes


# --------------------------------------------------------------------------- #
# Kernel: one batch tile; 4-matmul chain over `chunk`-row sub-slabs.
# --------------------------------------------------------------------------- #
def tiny_cnn_kernel(x_ref, w1_ref, b1_ref, w2_ref, b2_ref, w3_ref, b3_ref,
                    wf_ref, bf_ref, out_ref, *, chunk, n_full, tail):
    # Weights/biases are tiny and VMEM-resident (constant index_maps); load once.
    w1 = w1_ref[...]
    b1 = b1_ref[...]
    w2 = w2_ref[...]
    b2 = b2_ref[...]
    w3 = w3_ref[...]
    b3 = b3_ref[...]
    wf = wf_ref[...]
    bf = bf_ref[...]

    def run_rows(r0, rows):
        x = x_ref[pl.ds(r0, rows), :].astype(jnp.bfloat16)               # (rows, 64)
        h = jnp.dot(x, w1, preferred_element_type=jnp.float32)           # (rows, 288)
        h = jnp.maximum(h + b1, 0.0).astype(jnp.bfloat16)
        h = jnp.dot(h, w2, preferred_element_type=jnp.float32)           # (rows, 64)
        h = jnp.maximum(h + b2, 0.0).astype(jnp.bfloat16)
        h = jnp.dot(h, w3, preferred_element_type=jnp.float32)           # (rows, 32)
        h = jnp.maximum(h + b3, 0.0).astype(jnp.bfloat16)
        y = jnp.dot(h, wf, preferred_element_type=jnp.float32) + bf      # (rows, 128)
        out_ref[pl.ds(r0, rows), :] = y.astype(out_ref.dtype)

    if n_full == 1:
        run_rows(0, chunk)
    elif n_full > 1:
        def body(c, carry):
            run_rows(pl.multiple_of(c * chunk, chunk), chunk)
            return carry
        jax.lax.fori_loop(0, n_full, body, 0, unroll=n_full <= 4)
    if tail > 0:
        run_rows(n_full * chunk, tail)


# --------------------------------------------------------------------------- #
# Forward wrapper: grid shaping + pallas_call (no per-call weight relayout).
# --------------------------------------------------------------------------- #
def _cdiv(a, b):
    return (a + b - 1) // b


def _round_up(a, b):
    return _cdiv(a, b) * b


_ROW_ALIGN = 16   # keep tiles/chunks 16-row aligned (bf16 sublane packing)


@partial(jax.jit, static_argnames=("n_classes", "block_b", "chunk", "min_steps"))
def tiny_cnn_forward(x_nchw, params, *, n_classes, block_b=4096, chunk=512,
                     min_steps=8):
    """x_nchw: (B, 1, 8, 8) f32 (PyTorch layout). Returns (B, n_classes) f32.

    block_b : max batch rows per grid step (DMA tile). Thanks to in-kernel
              chunking the per-step VMEM stays ~5-6 MiB even at 4096.
    chunk   : rows per compute sub-slab inside a tile.
    min_steps: lower bound on grid steps (when B allows) so "parallel" grid
              sharding across v7x's two TensorCores actually has work.
    """
    w1_big, b1_t, w2_big, b2_t, w3_r, b3_r, wf_p, bf_p = params
    B = x_nchw.shape[0]
    n_pad = wf_p.shape[1]

    # ---- grid shaping: minimal padding, multi-step grid when B allows ----
    nt_max = max(1, _cdiv(B, _ROW_ALIGN))
    nt = min(max(_cdiv(B, block_b), min_steps), nt_max)
    bt = _round_up(_cdiv(B, nt), _ROW_ALIGN)
    bp = nt * bt                                      # padding < 16*nt rows

    x_flat = x_nchw.reshape(B, 64)                    # C == 1; lane-dense rows
    if bp != B:                                       # skip the pad copy when possible
        x_flat = jnp.pad(x_flat, ((0, bp - B), (0, 0)))

    # ---- compute chunk inside the (possibly large) DMA tile ----
    chunk_eff = min(_round_up(chunk, _ROW_ALIGN), bt)
    n_full = bt // chunk_eff
    tail = bt - n_full * chunk_eff

    const = lambda i: (0, 0)                          # weights stay VMEM-resident
    out = pl.pallas_call(
        partial(tiny_cnn_kernel, chunk=chunk_eff, n_full=n_full, tail=tail),
        out_shape=jax.ShapeDtypeStruct((bp, n_pad), jnp.bfloat16),
        grid=(bp // bt,),
        in_specs=[
            pl.BlockSpec((bt, 64), lambda i: (i, 0)),     # x: batch-tiled
            pl.BlockSpec((64, 288), const),
            pl.BlockSpec((1, 288), const),
            pl.BlockSpec((288, 64), const),
            pl.BlockSpec((1, 64), const),
            pl.BlockSpec((64, 32), const),
            pl.BlockSpec((1, 32), const),
            pl.BlockSpec((32, n_pad), const),
            pl.BlockSpec((1, n_pad), const),
        ],
        out_specs=pl.BlockSpec((bt, n_pad), lambda i: (i, 0)),
        compiler_params=pltpu.CompilerParams(
            dimension_semantics=("parallel",),            # shard grid over v7x's 2 TCs
            vmem_limit_bytes=32 * 1024 * 1024,            # > v5e's 16 MiB scoped default
        ),
    )(x_flat, w1_big, b1_t, w2_big, b2_t, w3_r, b3_r, wf_p, bf_p)

    return out[:B, :n_classes].astype(jnp.float32)


# --------------------------------------------------------------------------- #
# Plain-JAX f32 reference matching the PyTorch forward.
# --------------------------------------------------------------------------- #
def reference_forward(x_nchw, w1, b1, w2, b2, w3, b3, wf, bf):
    dn = ("NHWC", "HWIO", "NHWC")
    x = jnp.transpose(x_nchw, (0, 2, 3, 1))
    h = jax.lax.conv_general_dilated(x, w1, (1, 1), "VALID", dimension_numbers=dn)
    h = jax.nn.relu(h + b1.reshape(1, 1, 1, -1))
    h = jax.lax.conv_general_dilated(h, w2, (2, 2), "VALID", dimension_numbers=dn)
    h = jax.nn.relu(h + b2.reshape(1, 1, 1, -1))
    h = jax.lax.conv_general_dilated(h, w3, (1, 1), "VALID", dimension_numbers=dn)
    h = jax.nn.relu(h + b3.reshape(1, 1, 1, -1))
    h = h.reshape(h.shape[0], -1)                     # (B, 32)
    return h @ wf + bf


if __name__ == "__main__":
    key = jax.random.PRNGKey(0)
    ks = jax.random.split(key, 12)
    n_classes = 10

    def uinit(k, shape, fan_in):
        bound = 1.0 / (fan_in ** 0.5)
        return jax.random.uniform(k, shape, jnp.float32, -bound, bound)

    # PyTorch-default-style uniform init, weights kept in HWIO layout.
    w1 = uinit(ks[0], (3, 3, 1, 8), 1 * 3 * 3)
    b1 = uinit(ks[1], (1, 8), 1 * 3 * 3)
    w2 = uinit(ks[2], (3, 3, 8, 16), 8 * 3 * 3)
    b2 = uinit(ks[3], (1, 16), 8 * 3 * 3)
    w3 = uinit(ks[4], (2, 2, 16, 32), 16 * 2 * 2)
    b3 = uinit(ks[5], (1, 32), 16 * 2 * 2)
    wf = uinit(ks[6], (32, n_classes), 32)
    bf = uinit(ks[7], (1, n_classes), 32)

    # One-time weight relayout (host numpy) -> kernel-ready bf16 params.
    params, n_cls = init_tiny_cnn_params(w1, b1, w2, b2, w3, b3, wf, bf)

    def check(x, **kw):
        out = jax.block_until_ready(
            tiny_cnn_forward(x, params, n_classes=n_cls, **kw))
        ref = reference_forward(x, w1, b1, w2, b2, w3, b3, wf, bf)
        assert out.shape == ref.shape, (out.shape, ref.shape)
        # bf16 MXU operands + bf16 output store -> looser tolerance than f32.
        assert jnp.allclose(out, ref, atol=6e-2, rtol=6e-2), (out, ref)

    # Check 1: tiny batch -> single grid step, single compute chunk, padded tile.
    check(jax.random.normal(ks[8], (2, 1, 8, 8), jnp.float32))

    # Check 2: batch not divisible by the tile -> minimal pad, 4-step "parallel" grid.
    check(jax.random.normal(ks[9], (50, 1, 8, 8), jnp.float32))

    # Check 3: exercise the in-kernel fori_loop chunking + tail path (no padding).
    check(jax.random.normal(ks[10], (80, 1, 8, 8), jnp.float32),
          block_b=80, chunk=32, min_steps=1)

    print("KERNEL_OK")
</pallas_src>

<mosaic_0001>
module attributes {stable_mosaic.version = 11 : i64} {
  func.func @tiny_cnn_kernel(%arg0: i32, %arg1: memref<16x64xf32, #tpu.memory_space<vmem>>, %arg2: memref<64x288xbf16, #tpu.memory_space<vmem>>, %arg3: memref<1x288xf32, #tpu.memory_space<vmem>>, %arg4: memref<288x64xbf16, #tpu.memory_space<vmem>>, %arg5: memref<1x64xf32, #tpu.memory_space<vmem>>, %arg6: memref<64x32xbf16, #tpu.memory_space<vmem>>, %arg7: memref<1x32xf32, #tpu.memory_space<vmem>>, %arg8: memref<32x128xbf16, #tpu.memory_space<vmem>>, %arg9: memref<1x128xf32, #tpu.memory_space<vmem>>, %arg10: memref<16x128xbf16, #tpu.memory_space<vmem>>) attributes {dimension_semantics = [#tpu.dimension_semantics<parallel>], iteration_bounds = array<i64: 1>, scalar_prefetch = 0 : i64, scratch_operands = 0 : i64, tpu.core_type = #tpu.core_type<tc>, window_params = [{transform_indices = @transform_0, window_bounds = array<i64: 16, 64>}, {pipeline_mode = #tpu.pipeline_mode<synchronous>, transform_indices = @transform_1, window_bounds = array<i64: 64, 288>}, {pipeline_mode = #tpu.pipeline_mode<synchronous>, transform_indices = @transform_2, window_bounds = array<i64: 1, 288>}, {pipeline_mode = #tpu.pipeline_mode<synchronous>, transform_indices = @transform_3, window_bounds = array<i64: 288, 64>}, {pipeline_mode = #tpu.pipeline_mode<synchronous>, transform_indices = @transform_4, window_bounds = array<i64: 1, 64>}, {pipeline_mode = #tpu.pipeline_mode<synchronous>, transform_indices = @transform_5, window_bounds = array<i64: 64, 32>}, {pipeline_mode = #tpu.pipeline_mode<synchronous>, transform_indices = @transform_6, window_bounds = array<i64: 1, 32>}, {pipeline_mode = #tpu.pipeline_mode<synchronous>, transform_indices = @transform_7, window_bounds = array<i64: 32, 128>}, {pipeline_mode = #tpu.pipeline_mode<synchronous>, transform_indices = @transform_8, window_bounds = array<i64: 1, 128>}, {transform_indices = @transform_9, window_bounds = array<i64: 16, 128>}]} {
    %c0 = arith.constant 0 : index
    %c0_0 = arith.constant 0 : index
    %0 = vector.load %arg2[%c0, %c0_0] : memref<64x288xbf16, #tpu.memory_space<vmem>>, vector<64x288xbf16>
    %c0_1 = arith.constant 0 : index
    %c0_2 = arith.constant 0 : index
    %1 = vector.load %arg3[%c0_1, %c0_2] : memref<1x288xf32, #tpu.memory_space<vmem>>, vector<1x288xf32>
    %c0_3 = arith.constant 0 : index
    %c0_4 = arith.constant 0 : index
    %2 = vector.load %arg4[%c0_3, %c0_4] : memref<288x64xbf16, #tpu.memory_space<vmem>>, vector<288x64xbf16>
    %c0_5 = arith.constant 0 : index
    %c0_6 = arith.constant 0 : index
    %3 = vector.load %arg5[%c0_5, %c0_6] : memref<1x64xf32, #tpu.memory_space<vmem>>, vector<1x64xf32>
    %c0_7 = arith.constant 0 : index
    %c0_8 = arith.constant 0 : index
    %4 = vector.load %arg6[%c0_7, %c0_8] : memref<64x32xbf16, #tpu.memory_space<vmem>>, vector<64x32xbf16>
    %c0_9 = arith.constant 0 : index
    %c0_10 = arith.constant 0 : index
    %5 = vector.load %arg7[%c0_9, %c0_10] : memref<1x32xf32, #tpu.memory_space<vmem>>, vector<1x32xf32>
    %c0_11 = arith.constant 0 : index
    %c0_12 = arith.constant 0 : index
    %6 = vector.load %arg8[%c0_11, %c0_12] : memref<32x128xbf16, #tpu.memory_space<vmem>>, vector<32x128xbf16>
    %c0_13 = arith.constant 0 : index
    %c0_14 = arith.constant 0 : index
    %7 = vector.load %arg9[%c0_13, %c0_14] : memref<1x128xf32, #tpu.memory_space<vmem>>, vector<1x128xf32>
    %c0_15 = arith.constant 0 : index
    %c0_16 = arith.constant 0 : index
    %8 = vector.load %arg1[%c0_15, %c0_16] : memref<16x64xf32, #tpu.memory_space<vmem>>, vector<16x64xf32>
    %9 = arith.truncf %8 : vector<16x64xf32> to vector<16x64xbf16>
    %cst = arith.constant dense<0.000000e+00> : vector<16x288xf32>
    %10 = tpu.matmul %9, %0, %cst {dimension_numbers = #tpu.dot_dimension_numbers<[1], [0], [0], [1], [0, 0, 1, 1], [], []>} : vector<16x64xbf16>, vector<64x288xbf16>, vector<16x288xf32> -> vector<16x288xf32>
    %11 = vector.broadcast %1 : vector<1x288xf32> to vector<16x288xf32>
    %12 = arith.addf %10, %11 : vector<16x288xf32>
    %cst_17 = arith.constant 0.000000e+00 : f32
    %13 = vector.broadcast %cst_17 : f32 to vector<16x288xf32>
    %14 = arith.maximumf %12, %13 : vector<16x288xf32>
    %15 = arith.truncf %14 : vector<16x288xf32> to vector<16x288xbf16>
    %cst_18 = arith.constant dense<0.000000e+00> : vector<16x64xf32>
    %16 = tpu.matmul %15, %2, %cst_18 {dimension_numbers = #tpu.dot_dimension_numbers<[1], [0], [0], [1], [0, 0, 1, 1], [], []>} : vector<16x288xbf16>, vector<288x64xbf16>, vector<16x64xf32> -> vector<16x64xf32>
    %17 = vector.broadcast %3 : vector<1x64xf32> to vector<16x64xf32>
    %18 = arith.addf %16, %17 : vector<16x64xf32>
    %cst_19 = arith.constant 0.000000e+00 : f32
    %19 = vector.broadcast %cst_19 : f32 to vector<16x64xf32>
    %20 = arith.maximumf %18, %19 : vector<16x64xf32>
    %21 = arith.truncf %20 : vector<16x64xf32> to vector<16x64xbf16>
    %cst_20 = arith.constant dense<0.000000e+00> : vector<16x32xf32>
    %22 = tpu.matmul %21, %4, %cst_20 {dimension_numbers = #tpu.dot_dimension_numbers<[1], [0], [0], [1], [0, 0, 1, 1], [], []>} : vector<16x64xbf16>, vector<64x32xbf16>, vector<16x32xf32> -> vector<16x32xf32>
    %23 = vector.broadcast %5 : vector<1x32xf32> to vector<16x32xf32>
    %24 = arith.addf %22, %23 : vector<16x32xf32>
    %cst_21 = arith.constant 0.000000e+00 : f32
    %25 = vector.broadcast %cst_21 : f32 to vector<16x32xf32>
    %26 = arith.maximumf %24, %25 : vector<16x32xf32>
    %27 = arith.truncf %26 : vector<16x32xf32> to vector<16x32xbf16>
    %cst_22 = arith.constant dense<0.000000e+00> : vector<16x128xf32>
    %28 = tpu.matmul %27, %6, %cst_22 {dimension_numbers = #tpu.dot_dimension_numbers<[1], [0], [0], [1], [0, 0, 1, 1], [], []>} : vector<16x32xbf16>, vector<32x128xbf16>, vector<16x128xf32> -> vector<16x128xf32>
    %29 = vector.broadcast %7 : vector<1x128xf32> to vector<16x128xf32>
    %30 = arith.addf %28, %29 : vector<16x128xf32>
    %31 = arith.truncf %30 : vector<16x128xf32> to vector<16x128xbf16>
    %c0_23 = arith.constant 0 : index
    %c0_24 = arith.constant 0 : index
    %32 = vector.load %arg10[%c0_23, %c0_24] : memref<16x128xbf16, #tpu.memory_space<vmem>>, vector<16x128xbf16>
    tpu.vector_store %arg10[%c0_23, %c0_24], %31 {strides = array<i32>} : memref<16x128xbf16, #tpu.memory_space<vmem>>, vector<16x128xbf16>,
    return
  }
  func.func @transform_0(%arg0: i32) -> (i32, i32) {
    %c0_i32 = arith.constant 0 : i32
    %c0_i32_0 = arith.constant 0 : i32
    return %arg0, %c0_i32 : i32, i32
  }
  func.func @transform_1(%arg0: i32) -> (i32, i32) {
    %c0_i32 = arith.constant 0 : i32
    %c0_i32_0 = arith.constant 0 : i32
    %c0_i32_1 = arith.constant 0 : i32
    return %c0_i32, %c0_i32_0 : i32, i32
  }
  func.func @transform_2(%arg0: i32) -> (i32, i32) {
    %c0_i32 = arith.constant 0 : i32
    %c0_i32_0 = arith.constant 0 : i32
    %c0_i32_1 = arith.constant 0 : i32
    return %c0_i32, %c0_i32_0 : i32, i32
  }
  func.func @transform_3(%arg0: i32) -> (i32, i32) {
    %c0_i32 = arith.constant 0 : i32
    %c0_i32_0 = arith.constant 0 : i32
    %c0_i32_1 = arith.constant 0 : i32
    return %c0_i32, %c0_i32_0 : i32, i32
  }
  func.func @transform_4(%arg0: i32) -> (i32, i32) {
    %c0_i32 = arith.constant 0 : i32
    %c0_i32_0 = arith.constant 0 : i32
    %c0_i32_1 = arith.constant 0 : i32
    return %c0_i32, %c0_i32_0 : i32, i32
  }
  func.func @transform_5(%arg0: i32) -> (i32, i32) {
    %c0_i32 = arith.constant 0 : i32
    %c0_i32_0 = arith.constant 0 : i32
    %c0_i32_1 = arith.constant 0 : i32
    return %c0_i32, %c0_i32_0 : i32, i32
  }
  func.func @transform_6(%arg0: i32) -> (i32, i32) {
    %c0_i32 = arith.constant 0 : i32
    %c0_i32_0 = arith.constant 0 : i32
    %c0_i32_1 = arith.constant 0 : i32
    return %c0_i32, %c0_i32_0 : i32, i32
  }
  func.func @transform_7(%arg0: i32) -> (i32, i32) {
    %c0_i32 = arith.constant 0 : i32
    %c0_i32_0 = arith.constant 0 : i32
    %c0_i32_1 = arith.constant 0 : i32
    return %c0_i32, %c0_i32_0 : i32, i32
  }
  func.func @transform_8(%arg0: i32) -> (i32, i32) {
    %c0_i32 = arith.constant 0 : i32
    %c0_i32_0 = arith.constant 0 : i32
    %c0_i32_1 = arith.constant 0 : i32
    return %c0_i32, %c0_i32_0 : i32, i32
  }
  func.func @transform_9(%arg0: i32) -> (i32, i32) {
    %c0_i32 = arith.constant 0 : i32
    %c0_i32_0 = arith.constant 0 : i32
    return %arg0, %c0_i32 : i32, i32
  }
}

</mosaic_0001>

<bundles_post_ra>
// kernel: tiny_cnn_forward.1
= control target key start
LH: loop header
LB: loop body
LE: loop exit
PB: predicated region body
PF: predicated region fallthrough
CT: control target
= control target key end

     0   :  { %v811_v0 = vmov 0.0   ;;  %vm812_vm0 = vmmov 0   ;;  %v813_v3 = vmov 0   ;;  %vm184_vm1 = vcmask 523264   ;;  %s1018_s1 = inlined_call_operand.vmem [shape: bf16[64,288], index: 1, kind: input, shape index: {}]   ;;  %s1019_s0 = inlined_call_operand.vmem [shape: f32[16,64], index: 0, kind: input, shape index: {}]   ;;  %s1020_s3 = inlined_call_operand.vmem [shape: bf16[288,64], index: 3, kind: input, shape index: {}]   ;;  %s1021_s2 = inlined_call_operand.vmem [shape: f32[1,288], index: 2, kind: input, shape index: {}]   ;;  %s1022_s5 = inlined_call_operand.vmem [shape: bf16[64,32], index: 5, kind: input, shape index: {}]   ;;  %s1023_s4 = inlined_call_operand.vmem [shape: f32[1,64], index: 4, kind: input, shape index: {}]   ;;  %s1024_s7 = inlined_call_operand.vmem [shape: bf16[32,128], index: 7, kind: input, shape index: {}]   ;;  %s1025_s6 = inlined_call_operand.vmem [shape: f32[1,32], index: 6, kind: input, shape index: {}]   ;;  %s1026_s8 = inlined_call_operand.vmem [shape: f32[1,128], index: 8, kind: input, shape index: {}]   ;;  %s1027_s9 = inlined_call_operand.vmem [shape: bf16[16,128], index: 9, kind: output, shape index: {}]  }
   0x1   :  { %728 = vmatprep.subr.bf16.mxu1 %v811_v0  ;;  %v771_v1 = vld [vmem:[%s1018_s1 + $0x4c] ss:$12 sps:$4 sm:$0xff]   ;;  %736 = vmatprep.mubr.msk.bf16.mxu1 %vm812_vm0, %v811_v0  ;;  %v773_v2 = vld [vmem:[%s1018_s1 + $0x50] ss:$12 sps:$4 sm:$0xff]   ;;  %v774_v4 = vld [vmem:[%s1018_s1 + $0x48] ss:$12 sps:$4 sm:$0xff]   ;;  %v105_v35 = vlaneseq }
   0x2   :  { %220 = vmatprep.mubr.bf16.mxu0 %v813_v3  ;;  %196 = vmatprep.subr.bf16.mxu0 %v771_v1  ;;  %v775_v5 = vld [vmem:[%s1018_s1 + $0x34] ss:$12 sps:$4 sm:$0xff]   ;;  %v777_v6 = vld [vmem:[%s1018_s1 + $0x38] ss:$12 sps:$4 sm:$0xff]   ;;  %v778_v7 = vld [vmem:[%s1018_s1 + $0x30] ss:$12 sps:$4 sm:$0xff]  }
   0x3   :  { %729 = vmatpush3.bf16.msra.mxu1 %v773_v2  ;;  %197 = vmatpush1.bf16.msra.mxu0 %v774_v4  ;;  %v779_v8 = vld [vmem:[%s1018_s1 + $0x1c] ss:$12 sps:$4 sm:$0xff]   ;;  %v781_v9 = vld [vmem:[%s1018_s1 + $0x20] ss:$12 sps:$4 sm:$0xff]   ;;  %v782_v10 = vld [vmem:[%s1018_s1 + $0x18] ss:$12 sps:$4 sm:$0xff]  }
   0x4   :  { %730 = vmatprep.subr.bf16.mxu1 %v811_v0  ;;  %198 = vmatprep.subr.bf16.mxu0 %v775_v5  ;;  %v783_v11 = vld [vmem:[%s1018_s1 + $0x4] ss:$12 sps:$4 sm:$0xff]   ;;  %v785_v12 = vld [vmem:[%s1018_s1 + $0x8] ss:$12 sps:$4 sm:$0xff]   ;;  %v786_v15 = vld [vmem:[%s1018_s1] ss:$12 sps:$4 sm:$0xff]  }
   0x5   :  { %v101_v13 = vld [vmem:[%s1019_s0] sm:$0xff]  ;;  %v102_v14 = vld [vmem:[%s1019_s0 + $0x8] sm:$0xff]  ;;  %v787_v16 = vld [vmem:[%s1020_s3 + $0x78] sm:$0xff]   ;;  %v106_v36 = vshrl.u32 %v105_v35, 7  ;;  %vm395_vm2 = vcmask 261120  }
   0x6   :  { %v103_v17 = vpack.c.bf16 %v102_v14, %v101_v13  ;;  %v788_v18 = vld [vmem:[%s1020_s3 + $0x38] sm:$0xff]   ;;  %v789_v19 = vld [vmem:[%s1020_s3 + $0x70] sm:$0xff]   ;;  %v791_v21 = vld [vmem:[%s1020_s3 + $0x68] sm:$0xff]  }
   0x7   :  { %731 = vmatpush3.bf16.msra.mxu1 %v777_v6  ;;  %199 = vmatpush1.bf16.msra.mxu0 %v778_v7  ;;  %v790_v20 = vld [vmem:[%s1020_s3 + $0x30] sm:$0xff]   ;;  %v792_v22 = vld [vmem:[%s1020_s3 + $0x28] sm:$0xff]   ;;  %v793_v23 = vld [vmem:[%s1020_s3 + $0x60] sm:$0xff]   ;;  %v115_v37 = vsub.s32 2, %v106_v36  ;;  %v111_v40 = vsub.s32 1, %v106_v36  ;;  %v107_v41 = vsub.s32 0, %v106_v36 }
   0x8   :  { %732 = vmatprep.subr.bf16.mxu1 %v811_v0  ;;  %200 = vmatprep.subr.bf16.mxu0 %v779_v8  ;;  %v794_v24 = vld [vmem:[%s1020_s3 + $0x20] sm:$0xff]   ;;  %v795_v25 = vld [vmem:[%s1020_s3 + $0x58] sm:$0xff]   ;;  %v797_v27 = vld [vmem:[%s1020_s3 + $0x50] sm:$0xff]  }
   0x9   :  { %v796_v26 = vld [vmem:[%s1020_s3 + $0x18] sm:$0xff]   ;;  %v798_v28 = vld [vmem:[%s1020_s3 + $0x10] sm:$0xff]   ;;  %v799_v29 = vld [vmem:[%s1020_s3 + $0x88] sm:$0xff]  }
   0xa   :  { %v800_v30 = vld [vmem:[%s1020_s3 + $0x48] sm:$0xff]   ;;  %v802_v32 = vld [vmem:[%s1020_s3 + $0x80] sm:$0xff]   ;;  %v805_v4 = vld [vmem:[%s1022_s5 + $0x18] sm:$0xff]  }
   0xb   :  { %733 = vmatpush3.bf16.msra.mxu1 %v781_v9  ;;  %201 = vmatpush1.bf16.msra.mxu0 %v782_v10  ;;  %v801_v31 = vld [vmem:[%s1020_s3 + $0x8] sm:$0xff]   ;;  %v803_v33 = vld [vmem:[%s1020_s3 + $0x40] sm:$0xff]   ;;  %v806_v5 = vld [vmem:[%s1022_s5 + $0x10] sm:$0xff]  }
   0xc   :  { %734 = vmatprep.subr.bf16.mxu1 %v811_v0  ;;  %202 = vmatprep.subr.bf16.mxu0 %v783_v11  ;;  %v804_v34 = vld [vmem:[%s1020_s3] sm:$0xff]   ;;  %v807_v6 = vld [vmem:[%s1022_s5 + $0x8] sm:$0xff]  }
   0xd   :  { %v49_v38 = vld [vmem:[%s1021_s2] sm:$0x7] }
   0xe   :  { %v116_v39 = vrot.slane %v49_v38, %v115_v37  ;;  %v112_v46 = vrot.slane %v49_v38, %v111_v40  ;;  %v108_v47 = vrot.slane %v49_v38, %v107_v41  ;;  %v808_v7 = vld [vmem:[%s1022_s5] sm:$0xff]  }
   0xf   :  { %735 = vmatpush3.bf16.msra.mxu1 %v785_v12  ;;  %203 = vmatpush1.bf16.msra.mxu0 %v786_v15  ;;  %v651_v12 = vld [vmem:[%s1023_s4] ss:$0 sm:$0xff] }
  0x10   :  { %740 = vmatprep.subr.bf16.mxu1 %v811_v0  ;;  %695 = vmatprep.subr.bf16.mxu0 %v787_v16  ;;  %v677_v38 = vld [vmem:[%s1026_s8] ss:$0 sm:$0xff] }
  0x12   :  { %737 = vmatmul.mubr.msk.bf16.vlgmr.msra.gmra.mxu1 %vm184_vm1, %v103_v17  ;;  %649 = vmatmul.mubr.msk.bf16.vlgmr.msra.gmra.mxu0 %vm184_vm1, %v103_v17 }
  0x13   :  { %744 = vmatprep.mubr.msk.bf16.mxu1 %vm812_vm0, %v811_v0  ;;  %696 = vmatpush3.bf16.msra.mxu0 %v788_v18 }
  0x14   :  { %697 = vmatprep.subr.bf16.mxu0 %v789_v19  ;;  %741 = vmatpush3.bf16.msra.mxu1 %v799_v29 }
  0x15   :  { %742 = vmatprep.subr.bf16.mxu1 %v811_v0 }
  0x17   :  { %698 = vmatpush3.bf16.msra.mxu0 %v790_v20 }
  0x18   :  { %699 = vmatprep.subr.bf16.mxu0 %v791_v21  ;;  %743 = vmatpush3.bf16.msra.mxu1 %v802_v32 }
  0x19   :  { %748 = vmatprep.subr.bf16.mxu1 %v811_v0 }
  0x1b   :  { %700 = vmatpush3.bf16.msra.mxu0 %v792_v22 }
  0x1c   :  { %701 = vmatprep.subr.bf16.mxu0 %v793_v23 }
  0x1f   :  { %702 = vmatpush3.bf16.msra.mxu0 %v794_v24 }
  0x20   :  { %703 = vmatprep.subr.bf16.mxu0 %v795_v25 }
  0x23   :  { %704 = vmatpush3.bf16.msra.mxu0 %v796_v26  ;;  %v809_v26 = vld [vmem:[%s1024_s7 + $0x8] sm:$0xff]  }
  0x24   :  { %705 = vmatprep.subr.bf16.mxu0 %v797_v27  ;;  %v810_v27 = vld [vmem:[%s1024_s7] sm:$0xff]  }
  0x27   :  { %706 = vmatpush3.bf16.msra.mxu0 %v798_v28  ;;  %v671_v28 = vld [vmem:[%s1025_s6] ss:$0 sm:$0xff] }
  0x28   :  { %707 = vmatprep.subr.bf16.mxu0 %v800_v30 }
  0x2b   :  { %708 = vmatpush3.bf16.msra.mxu0 %v801_v31 }
  0x2c   :  { %709 = vmatprep.subr.bf16.mxu0 %v803_v33 }
  0x2f   :  { %710 = vmatpush3.bf16.msra.mxu0 %v804_v34 }
  0xd2   :  { %v265_v42 = vpop.f32.mrf.mxu1  ;;  %v222_v44 = vpop.f32.mrf.mxu0 }
  0xd3   :  { %v266_v43 = vadd.f32 %v265_v42, %v116_v39  ;;  %v223_v56 = vadd.f32 %v222_v44, %v108_v47 }
  0xd4   :  { %v738_v45 = vpop.f32.mrf.mxu1  ;;  %v224_v48 = vpop.f32.mrf.mxu0 }
  0xd5   :  { %v274_v50 = vmax.f32 %v266_v43, 0.0  ;;  %v225_v53 = vadd.f32 %v224_v48, %v112_v46  ;;  %v272_v1 = vmax.f32 %v223_v56, 0.0 }
  0xd6   :  { %v268_v49 = vpop.f32.mrf.mxu1  ;;  %v226_v52 = vpop.f32.mrf.mxu0 }
  0xd7   :  { %v269_v51 = vadd.f32 %v268_v49, %v116_v39  ;;  %v227_v54 = vadd.f32 %v226_v52, %v108_v47  ;;  %v273_v62 = vmax.f32 %v225_v53, 0.0 }
  0xd8   :  { %v739_v55 = vpop.f32.mrf.mxu1  ;;  %v228_v58 = vpop.f32.mrf.mxu0 }
  0xd9   :  { %v277_v57 = vmax.f32 %v269_v51, 0.0  ;;  %v229_v59 = vadd.f32 %v228_v58, %v112_v46  ;;  %v275_v61 = vmax.f32 %v227_v54, 0.0 }
  0xdb   :  { %v280_v60 = vpack.c.bf16 %v277_v57, %v274_v50  ;;  %v276_v63 = vmax.f32 %v229_v59, 0.0  ;;  %v278_v3 = vpack.c.bf16 %v275_v61, %v272_v1 }
  0xdd   :  { %745 = vmatmul.mubr.msk.bf16.vlgmr.msra.gmra.mxu1 %vm395_vm2, %v280_v60  ;;  %v279_v2 = vpack.c.bf16 %v276_v63, %v273_v62 }
  0xde   :  { %756 = vmatprep.mubr.msk.bf16.mxu1 %vm812_vm0, %v811_v0  ;;  %749 = vmatpush3.bf16.msra.mxu1 %v805_v4 }
  0xdf   :  { %431 = vmatprep.mubr.bf16.mxu0 %v279_v2  ;;  %750 = vmatprep.subr.bf16.mxu1 %v811_v0 }
  0xe0   :  { %432 = vmatmul.mubr.bf16.vlgmr.msra.gmra.mxu0 %v278_v3 }
  0xe2   :  { %751 = vmatpush3.bf16.msra.mxu1 %v806_v5 }
  0xe3   :  { %752 = vmatprep.subr.bf16.mxu1 %v811_v0 }
  0xe6   :  { %753 = vmatpush3.bf16.msra.mxu1 %v807_v6 }
  0xe7   :  { %754 = vmatprep.subr.bf16.mxu1 %v811_v0 }
  0xea   :  { %755 = vmatpush3.bf16.msra.mxu1 %v808_v7 }
  0xeb   :  { %760 = vmatprep.subr.bf16.mxu1 %v811_v0 }
 0x19d   :  { %v474_v8 = vpop.f32.mrf.mxu1 }
 0x19f   :  { %v746_v9 = vpop.f32.mrf.mxu1 }
 0x1a0   :  { %v711_v10 = vpop.f32.mrf.mxu0 }
 0x1a1   :  { %v477_v11 = vpop.f32.mrf.mxu1 }
 0x1a2   :  { %v712_v13 = vpop.f32.mrf.mxu0 }
 0x1a3   :  { %v747_v14 = vpop.f32.mrf.mxu1  ;;  %v713_v15 = vadd.f32 %v712_v13, %v711_v10 }
 0x1a4   :  { %v714_v16 = vpop.f32.mrf.mxu0 }
 0x1a5   :  { %v434_v17 = vadd.f32 %v713_v15, %v651_v12 }
 0x1a6   :  { %v715_v18 = vpop.f32.mrf.mxu0 }
 0x1a7   :  { %v716_v19 = vadd.f32 %v715_v18, %v714_v16  ;;  %v475_v20 = vadd.f32 %v474_v8, %v434_v17 }
 0x1a9   :  { %v437_v21 = vadd.f32 %v716_v19, %v651_v12  ;;  %v481_v23 = vmax.f32 %v475_v20, 0.0 }
 0x1ab   :  { %v478_v22 = vadd.f32 %v477_v11, %v437_v21 }
 0x1ad   :  { %v482_v24 = vmax.f32 %v478_v22, 0.0 }
 0x1af   :  { %v483_v25 = vpack.c.bf16 %v482_v24, %v481_v23 }
 0x1b1   :  { %757 = vmatmul.mubr.msk.bf16.vlgmr.msra.gmra.mxu1 %vm184_vm1, %v483_v25 }
 0x1b2   :  { %764 = vmatprep.mubr.msk.bf16.mxu1 %vm812_vm0, %v811_v0  ;;  %761 = vmatpush3.bf16.msra.mxu1 %v809_v26 }
 0x1b3   :  { %762 = vmatprep.subr.bf16.mxu1 %v811_v0 }
 0x1b6   :  { %763 = vmatpush3.bf16.msra.mxu1 %v810_v27 }
 0x271   :  { %v551_v29 = vpop.f32.mrf.mxu1 }
 0x272   :  { %v552_v31 = vadd.f32 %v671_v28, %v551_v29 }
 0x273   :  { %v758_v30 = vpop.f32.mrf.mxu1 }
 0x274   :  { %v558_v35 = vmax.f32 %v552_v31, 0.0 }
 0x275   :  { %v554_v32 = vpop.f32.mrf.mxu1 }
 0x276   :  { %v555_v33 = vadd.f32 %v671_v28, %v554_v32 }
 0x277   :  { %v759_v34 = vpop.f32.mrf.mxu1 }
 0x278   :  { %v559_v36 = vmax.f32 %v555_v33, 0.0 }
 0x27a   :  { %v560_v37 = vpack.c.bf16 %v559_v36, %v558_v35 }
 0x27c   :  { %765 = vmatmul.mubr.msk.bf16.vlgmr.msra.gmra.mxu1 %vm395_vm2, %v560_v37 }
 0x33c   :  { %v616_v0 = vpop.f32.mrf.mxu1 }
 0x33d   :  { %v617_v41 = vadd.f32 %v677_v38, %v616_v0 }
 0x33e   :  { %v766_v39 = vpop.f32.mrf.mxu1 }
 0x340   :  { %v619_v40 = vpop.f32.mrf.mxu1 }
 0x341   :  { %v620_v42 = vadd.f32 %v677_v38, %v619_v40 }
 0x342   :  { %v767_v43 = vpop.f32.mrf.mxu1 }
 0x343   :  { %v688_v44 = vpack.c.bf16 %v620_v42, %v617_v41 }
 0x345   :  { %689 = vst [vmem:[%s1027_s9] sm:$0xff] %v688_v44  }

</bundles_post_ra>
